<compile_context>
chip_gen: v7x
topology: tpu7x:2x2x1
jax: 0.10.0
libtpu: 0.0.40
codegen_flags: <defaults>
</compile_context>

<pallas_src>
import jax
import jax.numpy as jnp
from jax.experimental import pallas as pl
from jax.experimental.pallas import tpu as pltpu


def _round_up(x, m):
    return ((x + m - 1) // m) * m


def _mf_kernel(avg_ref, u_ref, it_ref, out_ref):
    # u_ref: [tm, F], it_ref: [F, tn], out_ref: [tm, tn], avg_ref: (1,) in SMEM.
    # Standard [M,K] x [K,N] contraction -> MXU native path, f32 accumulation.
    pred = jnp.dot(u_ref[...], it_ref[...], preferred_element_type=jnp.float32)
    out_ref[...] = (pred + avg_ref[0]).astype(out_ref.dtype)


def mf_predict_pallas(user_emb, item_emb, average, *, tm_max=512, tn_max=2048,
                      out_dtype=jnp.float32):
    """predict = user_emb @ item_emb.T + average, tiled Pallas TPU kernel.

    user_emb: [U, F] f32, item_emb: [I, F] f32, average: scalar -> [U, I].
    """
    U, F = user_emb.shape
    I, _ = item_emb.shape

    # M tile sublane-aligned (multiple of 8), N tile lane-dense (multiple of
    # 128) so output stores are unmasked `vst`.
    tm = _round_up(min(tm_max, U), 8)
    tn = _round_up(min(tn_max, I), 128)

    grid_u = pl.cdiv(U, tm)
    grid_i = pl.cdiv(I, tn)

    # One-time transpose to [F, I]: amortized over the whole grid, removes the
    # per-tile RHS relayout the [tn, F] layout would force.
    item_t = item_emb.T

    # Put the longer tile loop first so v7x megacore sharding of the leading
    # "parallel" axis keeps both TensorCores busy.
    if grid_u >= grid_i:
        grid = (grid_u, grid_i)
        u_map = lambda i, j: (i, 0)
        it_map = lambda i, j: (0, j)
        out_map = lambda i, j: (i, j)
    else:
        grid = (grid_i, grid_u)
        u_map = lambda j, i: (i, 0)
        it_map = lambda j, i: (0, j)
        out_map = lambda j, i: (i, j)

    avg = jnp.asarray(average, dtype=jnp.float32).reshape(1)  # 1-D SMEM scalar

    cost = pl.CostEstimate(
        flops=2 * U * I * F,
        transcendentals=0,
        # user tile re-read per item column pass, item tile re-read per user
        # row pass, output written once.
        bytes_accessed=4 * (grid_i * U * F + grid_u * I * F + U * I),
    )

    return pl.pallas_call(
        _mf_kernel,
        out_shape=jax.ShapeDtypeStruct((U, I), out_dtype),
        grid=grid,
        in_specs=[
            pl.BlockSpec(memory_space=pltpu.MemorySpace.SMEM),  # average scalar
            pl.BlockSpec((tm, F), u_map),                       # user tile [tm, F]
            pl.BlockSpec((F, tn), it_map),                      # item tile [F, tn]
        ],
        out_specs=pl.BlockSpec((tm, tn), out_map),
        compiler_params=pltpu.CompilerParams(
            dimension_semantics=("parallel", "parallel"),
        ),
        cost_estimate=cost,
    )(avg, user_emb, item_t)


def mf_predict(user_emb, item_emb, average, *, min_pallas_out_bytes=1 << 20,
               **pallas_kwargs):
    """Dispatch: plain XLA dot for tiny problems, Pallas kernel otherwise."""
    U, _ = user_emb.shape
    I, _ = item_emb.shape
    if U * I * 4 < min_pallas_out_bytes:
        out_dtype = pallas_kwargs.get("out_dtype", jnp.float32)
        pred = user_emb @ item_emb.T + jnp.asarray(average, jnp.float32)
        return pred.astype(out_dtype)
    return mf_predict_pallas(user_emb, item_emb, average, **pallas_kwargs)


class MFPallas:
    """JAX/Pallas equivalent of the PyTorch MF module."""

    def __init__(self, usernum, itemnum, factor_num, key):
        ku, ki = jax.random.split(key)
        # nn.Embedding default init: N(0, 1)
        self.embed_user = jax.random.normal(ku, (usernum, factor_num), jnp.float32)
        self.embed_item = jax.random.normal(ki, (itemnum, factor_num), jnp.float32)

    def __call__(self, user, item, average):
        # Embedding lookup (gather) — glue in plain JAX.
        user_emb = jnp.take(self.embed_user, user, axis=0)  # [U, F]
        item_emb = jnp.take(self.embed_item, item, axis=0)  # [I, F]
        predict = mf_predict(user_emb, item_emb, average)   # [U, I]
        return predict, user_emb, item_emb


if __name__ == "__main__":
    key = jax.random.PRNGKey(0)
    k_model, k_user, k_item = jax.random.split(key, 3)

    usernum, itemnum, factor_num = 300, 500, 32
    model = MFPallas(usernum, itemnum, factor_num, k_model)
    average = jnp.float32(3.5)

    # Case 1: exercise the Pallas kernel directly with batch sizes that are NOT
    # tile multiples (ragged edge blocks on both axes; small tile caps force a
    # multi-tile grid and the swapped grid-ordering path).
    U, I = 100, 300
    user_idx = jax.random.randint(k_user, (U,), 0, usernum, dtype=jnp.int32)
    item_idx = jax.random.randint(k_item, (I,), 0, itemnum, dtype=jnp.int32)

    u_emb = jnp.take(model.embed_user, user_idx, axis=0)   # [100, 32]
    i_emb = jnp.take(model.embed_item, item_idx, axis=0)   # [300, 32]
    predict = mf_predict_pallas(u_emb, i_emb, average, tm_max=64, tn_max=128)
    jax.block_until_ready(predict)

    ref = u_emb @ i_emb.T + average
    assert predict.shape == (U, I)
    assert jnp.allclose(predict, ref, atol=5e-3, rtol=5e-3)

    # Case 2: full module path (tiny batch routes through the jnp.dot fallback).
    p2, u2, i2 = model(user_idx[:8], item_idx[:8], average)
    jax.block_until_ready((p2, u2, i2))
    assert p2.shape == (8, 8) and u2.shape == (8, factor_num) and i2.shape == (8, factor_num)
    assert jnp.allclose(p2, u2 @ i2.T + average, atol=1e-5, rtol=1e-5)

    print("KERNEL_OK")
</pallas_src>

<mosaic_0001>
module attributes {stable_mosaic.version = 11 : i64} {
  func.func @_mf_kernel(%arg0: i32, %arg1: i32, %arg2: memref<1xf32, #tpu.memory_space<smem>>, %arg3: memref<64x32xf32, #tpu.memory_space<vmem>>, %arg4: memref<32x128xf32, #tpu.memory_space<vmem>>, %arg5: memref<64x128xf32, #tpu.memory_space<vmem>>) attributes {dimension_semantics = [#tpu.dimension_semantics<parallel>, #tpu.dimension_semantics<parallel>], iteration_bounds = array<i64: 3, 2>, scalar_prefetch = 0 : i64, scratch_operands = 0 : i64, tpu.core_type = #tpu.core_type<tc>, window_params = [{transform_indices = @transform_0, window_bounds = array<i64: 1>}, {transform_indices = @transform_1, window_bounds = array<i64: 64, 32>}, {transform_indices = @transform_2, window_bounds = array<i64: 32, 128>}, {transform_indices = @transform_3, window_bounds = array<i64: 64, 128>}]} {
    %c0 = arith.constant 0 : index
    %c0_0 = arith.constant 0 : index
    %0 = vector.load %arg3[%c0, %c0_0] : memref<64x32xf32, #tpu.memory_space<vmem>>, vector<64x32xf32>
    %c0_1 = arith.constant 0 : index
    %c0_2 = arith.constant 0 : index
    %1 = vector.load %arg4[%c0_1, %c0_2] : memref<32x128xf32, #tpu.memory_space<vmem>>, vector<32x128xf32>
    %cst = arith.constant dense<0.000000e+00> : vector<64x128xf32>
    %2 = tpu.matmul %0, %1, %cst {dimension_numbers = #tpu.dot_dimension_numbers<[1], [0], [0], [1], [0, 0, 1, 1], [], []>} : vector<64x32xf32>, vector<32x128xf32>, vector<64x128xf32> -> vector<64x128xf32>
    %c0_3 = arith.constant 0 : index
    %3 = memref.load %arg2[%c0_3] : memref<1xf32, #tpu.memory_space<smem>>
    %4 = vector.broadcast %3 : f32 to vector<64x128xf32>
    %5 = arith.addf %2, %4 : vector<64x128xf32>
    %c0_4 = arith.constant 0 : index
    %c0_5 = arith.constant 0 : index
    %6 = vector.load %arg5[%c0_4, %c0_5] : memref<64x128xf32, #tpu.memory_space<vmem>>, vector<64x128xf32>
    tpu.vector_store %arg5[%c0_4, %c0_5], %5 {strides = array<i32>} : memref<64x128xf32, #tpu.memory_space<vmem>>, vector<64x128xf32>,
    return
  }
  func.func @transform_0(%arg0: i32, %arg1: i32) -> i32 {
    %c0_i32 = arith.constant 0 : i32
    %c0_i32_0 = arith.constant 0 : i32
    return %c0_i32 : i32
  }
  func.func @transform_1(%arg0: i32, %arg1: i32) -> (i32, i32) {
    %c0_i32 = arith.constant 0 : i32
    %c0_i32_0 = arith.constant 0 : i32
    return %arg1, %c0_i32 : i32, i32
  }
  func.func @transform_2(%arg0: i32, %arg1: i32) -> (i32, i32) {
    %c0_i32 = arith.constant 0 : i32
    %c0_i32_0 = arith.constant 0 : i32
    return %c0_i32, %arg0 : i32, i32
  }
  func.func @transform_3(%arg0: i32, %arg1: i32) -> (i32, i32) {
    %c0_i32 = arith.constant 0 : i32
    return %arg1, %arg0 : i32, i32
  }
}

</mosaic_0001>

<bundles_post_ra>
// kernel: tpu_custom_call.1
= control target key start
LH: loop header
LB: loop body
LE: loop exit
PB: predicated region body
PF: predicated region fallthrough
CT: control target
= control target key end

     0   :  { %s1280_s0 = inlined_call_operand.<no memory space> [shape: f32[1], index: 0, kind: input, shape index: {}]   ;;  %s1281_s1 = inlined_call_operand.vmem [shape: f32[100,32], index: 1, kind: input, shape index: {}]   ;;  %s1282_s2 = inlined_call_operand.vmem [shape: f32[32,300], index: 2, kind: input, shape index: {}]   ;;  %s1283_s3 = inlined_call_operand.vmem [shape: f32[100,300], index: 3, kind: output, shape index: {}]  }
   0x1   :  { %8 = sst [smem:[#allocation2]] %s1280_s0 }
   0x2   :  { %s1077_s14 = smov 0   ;;  %s1079_s15 = smov 0  }
   0x3   :  { %s1081_s16 = smov 0   ;;  %s1083_s17 = smov 0  }
   0x4   :  { %s1085_s18 = smov 0   ;;  %s1087_s19 = smov 0  }
   0x5   :  { %s1089_s20 = smov 0   ;;  %s1091_s21 = smov 0  }
   0x6   :  { %s1093_s22 = smov 0  }
   0x7 LB: > { %s23_s0 = sadd.s32 1, %s1012_s20  ;;  %s26_s23 = sadd.s32 1, %s1016_s21  ;;  %s1020_s22 = sphi %s1093_s22, %s14_s22   ;;  %s1016_s21 = sphi %s1091_s21, %s1296_s21   ;;  %s1012_s20 = sphi %s1089_s20, %s1295_s20   ;;  %s1008_s19 = sphi %s1087_s19, %s1294_s19   ;;  %s1004_s18 = sphi %s1085_s18, %s1293_s18   ;;  %s1000_s17 = sphi %s1083_s17, %s1292_s17   ;;  %s996_s16 = sphi %s1081_s16, %s1291_s16   ;;  %s992_s15 = sphi %s1079_s15, %s1290_s15   ;;  %s988_s14 = sphi %s1077_s14, %s1289_s14  }
   0x8   : > { %p24_p0 = scmp.ge.s32.totalorder %s23_s0, 2  ;;  %p87_p1 = scmp.ne.s32.totalorder %s1000_s17, %s996_s16 }
   0x9   : > { %s701_s24 = sadd.s32 4294967295, %s1020_s22   ;;  %p88_p2 = scmp.eq.s32.totalorder %s1020_s22, 0 }
   0xa   : > { %s1298_s0 = smov (%p24_p0, %s23_s0), 0  ;;  %s1300_s23 = smov (!%p24_p0, %s26_s23), %s1016_s21 }
   0xb   : > { %p28_p3 = scmp.ge.s32.totalorder %s1300_s23, 3  ;;  %s103_s25 = ssub.s32 %s1012_s20, %s1298_s0 }
   0xc   : > { %p1133_p4 = por %p88_p2, %p87_p1  ;;  %p118_p5 = scmp.ne.s32.totalorder %s992_s15, %s988_s14 }
   0xd   : > { %s1302_s23 = smov (%p28_p3, %s1300_s23), 0  ;;  %s80_s27 = sadd.s32 1, %s1000_s17 }
   0xe   : > { %p119_p6 = scmp.eq.s32.totalorder %s701_s24, 5  ;;  %s77_s28 = ssub.s32 %s1016_s21, %s1302_s23 }
   0xf   : > { %s108_s29 = sadd.s32 1, %s992_s15  ;;  %p78_p7 = scmp.eq.s32.totalorder %s77_s28, 0 }
  0x10   : > { %s105_s30 = sor.u32 %s103_s25, %s77_s28  ;;  %p1145_p9 = por %p119_p6, %p118_p5 }
  0x11   : > { %p106_p8 = scmp.eq.s32.totalorder %s105_s30, 0  ;;  %p704_p10 = scmp.ge.s32.totalorder %s1020_s22, 6 }
  0x12   : > { %s1150_s5 = scalar_select %p78_p7, %s1000_s17, %s80_s27  }
  0x13   : > { %s1153_s6 = scalar_select %p106_p8, %s992_s15, %s108_s29  }
  0x14   : > { %144 = sbr.rel (%p704_p10) target bundleno = 34 (0x22), region = 20 }
  0x1b   : > { %164 = sbr.rel (!%p1133_p4) target bundleno = 34 (0x22), region = 28  ;;  %s166_s7 = sand.u32 (%p1133_p4), 1, %s1000_s17  }
  0x1c   : > { %s706_s8 = sshll.u32 (%p1133_p4), %s1016_s21, 3  ;;  %s705_s9 = sshll.u32 (%p1133_p4), %s166_s7, 5 }
  0x1d   : > { %s170_s12 = scalar_lea.vmem (%p1133_p4), %s1282_s2, %s706_s8  ;;  %s168_s13 = scalar_lea.vmem (%p1133_p4), [#allocation3], %s705_s9 }
  0x1e   : > { %v204_v0 = vld [vmem:[%s170_s12] sm:$0xff] (%p1133_p4)  ;;  %v206_v1 = vld [vmem:[%s170_s12 + $0x18] sm:$0xff] (%p1133_p4)  ;;  %v208_v2 = vld [vmem:[%s170_s12 + $0x30] sm:$0xff] (%p1133_p4) }
  0x1f   : > { %205 = vst [vmem:[%s168_s13] sm:$0xff] (%p1133_p4), %v204_v0  ;;  %207 = vst [vmem:[%s168_s13 + $0x8] sm:$0xff] (%p1133_p4), %v206_v1  ;;  %v210_v3 = vld [vmem:[%s170_s12 + $0x48] sm:$0xff] (%p1133_p4) }
  0x20   : > { %209 = vst [vmem:[%s168_s13 + $0x10] sm:$0xff] (%p1133_p4), %v208_v2  ;;  %211 = vst [vmem:[%s168_s13 + $0x18] sm:$0xff] (%p1133_p4), %v210_v3 }
  0x22 PF: > { %p707_p11 = scmp.ge.s32.totalorder %s1020_s22, 1  ;;  %p216_p12 = scmp.lt.s32.totalorder %s1020_s22, 7 }
  0x24   : > { %p217_p13 = pnand %p707_p11, %p216_p12 }
  0x25   : > { %s223_s24 = sand.u32 (!%p217_p13), 1, %s996_s16   ;;  %s1167_s25 = sshll.u32 (!%p217_p13), %s1004_s18, 3  ;;  %vm287_vm0 = vcmask (!%p217_p13), 261120  }
  0x26   : > { %220 = sbr.rel (%p217_p13) target bundleno = 321 (0x141), region = 66  ;;  %s708_s26 = sshll.u32 (!%p217_p13), %s223_s24, 5 }
  0x27   : > { %p259_p0 = scmp.lt.s32.totalorder (!%p217_p13), %s1167_s25, 12  ;;  %s225_s27 = scalar_lea.vmem (!%p217_p13), [#allocation3], %s708_s26 }
  0x28   : > { %v281_v4 = vld [vmem:[%s225_s27] sm:$0xff] (!%p217_p13)  ;;  %v282_v5 = vld [vmem:[%s225_s27 + $0x8] sm:$0xff] (!%p217_p13)  ;;  %v283_v6 = vld [vmem:[%s225_s27 + $0x10] sm:$0xff] (!%p217_p13)  ;;  %s285_s8 = sld [smem:[#allocation2]] (!%p217_p13)  ;;  %s251_s9 = sand.u32 (!%p217_p13), 1, %s988_s14  }
  0x29   : > { %v769_v7 = vpack.c.bf16 (!%p217_p13), %v282_v5, %v281_v4  ;;  %v284_v8 = vld [vmem:[%s225_s27 + $0x18] sm:$0xff] (!%p217_p13)  ;;  %s709_s10 = sshll.u32 (!%p217_p13), %s251_s9, 6 }
  0x2a   : > { %v773_v9 = vpack.c.bf16 (!%p217_p13), %v284_v8, %v283_v6  ;;  %s1183_s11 = scalar_lea.vmem (!%p217_p13), [#allocation4], %s709_s10  }
  0x2b   : > { %770 = vmatprep.subr.bf16.mxu0 (!%p217_p13), %v769_v7  ;;  %777 = vmatprep.subr.bf16.mxu1 (!%p217_p13), %v769_v7 }
  0x2c   : > { %772 = vmatpush3.bf16.msra.mxu0 (!%p217_p13), %v769_v7  ;;  %779 = vmatpush3.bf16.msra.mxu1 (!%p217_p13), %v769_v7 }
  0x2d   : > { %s260_s28 = scalar_select %p259_p0, %s1167_s25, 12  ;;  %774 = vmatprep.subr.bf16.mxu0 %v773_v9  ;;  %778 = vmatprep.subr.bf16.mxu1 %v773_v9 }
  0x2e   : > { %v286_v18 = vstv %s285_s8  ;;  %s433_s14 = ssub.s32 (%p1145_p9), 13, %s1167_s25  ;;  %s781_s12 = smul.u32 (%p1145_p9), 24, %s1004_s18 }
  0x2f   : > { %s711_s29 = sshll.u32 %s260_s28, 3  ;;  %p434_p1 = scmp.lt.s32.totalorder (%p1145_p9), %s433_s14, 8 }
  0x30   : > { %s262_s16 = scalar_lea.vmem %s1281_s1, %s711_s29  ;;  %776 = vmatpush3.bf16.msra.mxu0 %v773_v9  ;;  %780 = vmatpush3.bf16.msra.mxu1 %v773_v9  ;;  %s439_s13 = sadd.s32 (%p1145_p9), %s1008_s19, %s781_s12 }
  0x31   : > { %v273_v10 = vld [vmem:[%s262_s16] sm:$0xff]  ;;  %v274_v12 = vld [vmem:[%s262_s16 + $0x8] sm:$0xff]  ;;  %v275_v14 = vld [vmem:[%s262_s16 + $0x10] sm:$0xff]  ;;  %s725_s24 = sshll.u32 (%p1145_p9), %s439_s13, 3 }
  0x32   : > { %v277_v11 = vld [vmem:[%s262_s16 + $0x20] sm:$0xff]  ;;  %757 = vmatprep.mubr.msk.f32.mxu0 %vm287_vm0, %v273_v10  ;;  %v278_v13 = vld [vmem:[%s262_s16 + $0x28] sm:$0xff]  ;;  %v279_v15 = vld [vmem:[%s262_s16 + $0x30] sm:$0xff]  ;;  %s1204_s29 = scalar_lea.vmem (%p1145_p9), %s1283_s3, %s725_s24  }
  0x33   : > { %763 = vmatprep.mubr.msk.f32.mxu1 %vm287_vm0, %v277_v11  ;;  %758 = vmatmul.mubr.msk.f32.vlgmr.msra.gmra.mrb[0].mxu0 %vm287_vm0, %v274_v12  ;;  %v276_v16 = vld [vmem:[%s262_s16 + $0x18] sm:$0xff] }
  0x34   : > { %764 = vmatmul.mubr.msk.f32.vlgmr.msra.gmra.mrb[0].mxu1 %vm287_vm0, %v278_v13  ;;  %760 = vmatprep.mubr.msk.f32.mxu0 %vm287_vm0, %v275_v14  ;;  %v280_v17 = vld [vmem:[%s262_s16 + $0x38] sm:$0xff] }
  0x35   : > { %766 = vmatprep.mubr.msk.f32.mxu1 %vm287_vm0, %v279_v15 }
  0x37   : > { %761 = vmatmul.mubr.msk.f32.gmra.mrb[2].mxu0 %vm287_vm0, %v276_v16 }
  0x38   : > { %767 = vmatmul.mubr.msk.f32.gmra.mrb[2].mxu1 %vm287_vm0, %v280_v17 }
 0x106   : > { %v759_v19 = vpop.f32.mrb[0].mxu0 }
 0x107   : > { %v765_v20 = vpop.f32.mrb[0].mxu1  ;;  %v384_v21 = vadd.f32 %v759_v19, %v286_v18  ;;  %v378_v23 = vpop.f32.mrb[1].mxu0 }
 0x108   : > { %v404_v22 = vadd.f32 %v765_v20, %v286_v18  ;;  %v398_v24 = vpop.f32.mrb[1].mxu1  ;;  %v379_v25 = vadd.f32 %v378_v23, %v286_v18 }
 0x109   : > { %v399_v26 = vadd.f32 %v398_v24, %v286_v18  ;;  %418 = vst [vmem:[%s1183_s11 + $0x8] sm:$0xff] %v384_v21  ;;  %431 = sbr.rel (!%p1145_p9) target bundleno = 321 (0x141), region = 74 }
 0x10a   : > { %422 = vst [vmem:[%s1183_s11 + $0x28] sm:$0xff] %v404_v22  ;;  %417 = vst [vmem:[%s1183_s11] sm:$0xff] %v379_v25  ;;  %v762_v27 = vpop.f32.mrb[2].mxu0 }
 0x10b   : > { %421 = vst [vmem:[%s1183_s11 + $0x20] sm:$0xff] %v399_v26  ;;  %v768_v28 = vpop.f32.mrb[2].mxu1  ;;  %v394_v29 = vadd.f32 %v762_v27, %v286_v18  ;;  %v388_v31 = vpop.f32.mrb[3].mxu0 }
 0x10c   : > { %v414_v30 = vadd.f32 %v768_v28, %v286_v18  ;;  %v408_v32 = vpop.f32.mrb[3].mxu1  ;;  %v389_v33 = vadd.f32 %v388_v31, %v286_v18 }
 0x10d   : > { %v409_v34 = vadd.f32 %v408_v32, %v286_v18  ;;  %420 = vst [vmem:[%s1183_s11 + $0x18] sm:$0xff] %v394_v29 }
 0x10e   : > { %424 = vst [vmem:[%s1183_s11 + $0x38] sm:$0xff] %v414_v30  ;;  %419 = vst [vmem:[%s1183_s11 + $0x10] sm:$0xff] %v389_v33 }
 0x10f   : > { %423 = vst [vmem:[%s1183_s11 + $0x30] sm:$0xff] %v409_v34 }
 0x110   : > { %s1304_s14 = smov (!%p434_p1, %s433_s14), 8 }
 0x111   : > { %s722_s26 = sshll.u32 %s1304_s14, 7 }
 0x112   : > { %p726_p2 = scmp.eq.s32.totalorder %s722_s26, 0 }
 0x113   : > { %s1207_s4 = sshrl.u32 (!%p726_p2), %s1304_s14, 3 }
 0x114   : > { %444 = sbr.rel (%p726_p2) target bundleno = 321 (0x141), region = 78  ;;  %p727_p3 = scmp.le.s32.totalorder (!%p726_p2), %s1207_s4, 0 }
 0x11b   : > { %640 = sbr.rel (%p727_p3) target bundleno = 300 (0x12c), region = 162  ;;  %s1286_s18 = smov (!%p727_p3), %s1204_s29 }
 0x11c   : > { %s1287_s19 = smov (!%p727_p3), %s1183_s11  ;;  %s1216_s25 = smov (!%p727_p3), 0  }
 0x11d   : > { %s1218_s30 = smov (!%p727_p3), 0  }
 0x122 LB: >> { %v520_v35 = vld [vmem:[%s1028_s19] sm:$0xff]  ;;  %v522_v36 = vld [vmem:[%s1028_s19 + $0x8] sm:$0xff]  ;;  %v524_v37 = vld [vmem:[%s1028_s19 + $0x10] sm:$0xff]  ;;  %s536_s7 = sadd.s32 1, %s1032_s25  ;;  %s514_s30 = sadd.s32 1, %s1036_s30   ;;  %s1036_s30 = sphi %s1218_s30, %s514_s30   ;;  %s1032_s25 = sphi %s1216_s25, %s1288_s25   ;;  %s1028_s19 = sphi %s1287_s19, %s541_s19   ;;  %s1024_s18 = sphi %s1286_s18, %s542_s18  }
 0x123   : >> { %521 = vst [vmem:[%s1024_s18] sm:$0xff] %v520_v35  ;;  %523 = vst [vmem:[%s1024_s18 + $0x18] sm:$0xff] %v522_v36  ;;  %v526_v38 = vld [vmem:[%s1028_s19 + $0x18] sm:$0xff]  ;;  %v528_v39 = vld [vmem:[%s1028_s19 + $0x20] sm:$0xff]  ;;  %p537_p4 = scmp.ge.s32.totalorder %s536_s7, %s1207_s4  ;;  %p513_p5 = scmp.ge.s32.totalorder %s514_s30, %s1207_s4 }
 0x124   : >> { %525 = vst [vmem:[%s1024_s18 + $0x30] sm:$0xff] %v524_v37  ;;  %v530_v40 = vld [vmem:[%s1028_s19 + $0x28] sm:$0xff]  ;;  %527 = vst [vmem:[%s1024_s18 + $0x48] sm:$0xff] %v526_v38  ;;  %v532_v41 = vld [vmem:[%s1028_s19 + $0x30] sm:$0xff] }
 0x125   : >> { %529 = vst [vmem:[%s1024_s18 + $0x60] sm:$0xff] %v528_v39  ;;  %531 = vst [vmem:[%s1024_s18 + $0x78] sm:$0xff] %v530_v40  ;;  %v534_v42 = vld [vmem:[%s1028_s19 + $0x38] sm:$0xff]  ;;  %s1306_s7 = smov (%p537_p4, %s536_s7), 0  ;;  %516 = sbr.rel (!%p513_p5) target bundleno = 290 (0x122), region = 168 }
 0x126   : >> { %533 = vst [vmem:[%s1024_s18 + $0x90] sm:$0xff] %v532_v41  ;;  %535 = vst [vmem:[%s1024_s18 + $0xa8] sm:$0xff] %v534_v42  ;;  %s728_s16 = sshll.u32 %s1306_s7, 6  ;;  %s540_s8 = smul.u32 192, %s1306_s7 }
 0x127   : >> { %s541_s19 = scalar_lea.vmem %s1183_s11, %s728_s16 [#allocation4]   ;;  %s1288_s25 = smov %s1306_s7 }
 0x128   : >> { %s542_s18 = scalar_lea.vmem %s1204_s29, %s540_s8  }
 0x12c PF: > { %s1240_s9 = sand.u32 7, %s1304_s14   ;;  %s736_s10 = sshll.u32 %s1207_s4, 6 }
 0x12d   : > { %s1244_s12 = scalar_lea.vmem %s1183_s11, %s736_s10 [#allocation4]   ;;  %s731_s13 = smul.u32 192, %s1207_s4 }
 0x12e   : > { %p732_p6 = scmp.le.s32.totalorder %s1240_s9, 0 }
 0x12f   : > { %s549_s24 = scalar_lea.vmem %s1204_s29, %s731_s13   ;;  %s1042_s27 = smov (!%p732_p6), %s1244_s12  }
 0x130   : > { %654 = sbr.rel (%p732_p6) target bundleno = 321 (0x141), region = 173  ;;  %s1038_s26 = smov (!%p732_p6), %s549_s24  }
 0x131   : > { %s1046_s28 = smov (!%p732_p6), 0   ;;  %s1050_s18 = smov (!%p732_p6), 0  }
 0x137 LB: >> { %v559_v43 = vld [vmem:[%s1044_s27] sm:$0xff]  ;;  %s561_s11 = sadd.s32 1, %s1048_s28  ;;  %s553_s18 = sadd.s32 1, %s1052_s18   ;;  %s1052_s18 = sphi %s1050_s18, %s553_s18   ;;  %s1048_s28 = sphi %s1046_s28, %s1047_s28   ;;  %s1044_s27 = sphi %s1042_s27, %s566_s27   ;;  %s1040_s26 = sphi %s1038_s26, %s567_s26  }
 0x138   : >> { %560 = vst [vmem:[%s1040_s26] sm:$0xff] %v559_v43  ;;  %p562_p7 = scmp.ge.s32.totalorder %s561_s11, %s1240_s9  ;;  %p552_p8 = scmp.ge.s32.totalorder %s553_s18, %s1240_s9 }
 0x13a   : >> { %s1308_s11 = smov (%p562_p7, %s561_s11), 0  ;;  %555 = sbr.rel (!%p552_p8) target bundleno = 311 (0x137), region = 179 }
 0x13b   : >> { %s733_s14 = sshll.u32 %s1308_s11, 3  ;;  %s565_s29 = smul.u32 24, %s1308_s11 }
 0x13c   : >> { %s566_s27 = scalar_lea.vmem %s1244_s12, %s733_s14 [#allocation4]   ;;  %s1047_s28 = smov %s1308_s11  }
 0x13d   : >> { %s567_s26 = scalar_lea.vmem %s549_s24, %s565_s29  }
 0x141 PF: > { %s14_s22 = sadd.s32 1, %s1020_s22   ;;  %s1289_s14 = smov %s992_s15 }
 0x142   : > { %p11_p9 = scmp.ge.s32.totalorder %s14_s22, 8   ;;  %s1290_s15 = smov %s1153_s6 }
 0x143   : > { %s1291_s16 = smov %s1000_s17  ;;  %s1292_s17 = smov %s1150_s5 }
 0x144   : > { %s1293_s18 = smov %s1012_s20  ;;  %s1294_s19 = smov %s1016_s21 }
 0x145   : > { %s1295_s20 = smov %s1298_s0  ;;  %s1296_s21 = smov %s1302_s23 }
 0x146   :  { %13 = sbr.rel (!%p11_p9) target bundleno = 7 (0x7), region = 190 }

</bundles_post_ra>
